<compile_context>
chip_gen: v7x
topology: tpu7x:2x2x1
jax: 0.10.0
libtpu: 0.0.40
codegen_flags: <defaults>
</compile_context>

<pallas_src>
import jax
import jax.numpy as jnp
from jax.experimental import pallas as pl
from jax.experimental.pallas import tpu as pltpu


def _round_up(x, m):
    return ((x + m - 1) // m) * m


def dqn_kernel(x_ref, w1_ref, b1_ref, w2_ref, b2_ref, w3_ref, b3_ref, o_ref):
    # First (dominant) matmul: bf16 x @ bf16 w1 on the MXU, f32 accumulation.
    h1 = jnp.dot(x_ref[...], w1_ref[...], preferred_element_type=jnp.float32)
    h1 = jnp.maximum(h1 + b1_ref[...], 0.0)          # f32 bias add + ReLU (VPU)
    h2 = jnp.dot(h1, w2_ref[...], preferred_element_type=jnp.float32)
    h2 = jnp.maximum(h2 + b2_ref[...], 0.0)
    o_ref[...] = (
        jnp.dot(h2, w3_ref[...], preferred_element_type=jnp.float32) + b3_ref[...]
    )


def dqn_forward(x_nchw, params, *, tb_target=1024):
    """x_nchw: (B, 3, H, W) float32. Returns (B, 2) float32."""
    w1, b1, w2, b2, w3, b3 = params
    B = x_nchw.shape[0]
    # torch.flatten(start_dim=1) on NCHW -> (B, C*H*W), channel-major.
    # Keep the reshape on the XLA side (cheap layout op); never in-kernel.
    x = x_nchw.reshape(B, -1)
    F_in = x.shape[1]

    # Lane-align the contraction dim; pick a large sublane-aligned batch tile.
    F_pad = _round_up(F_in, 128)
    TB = min(tb_target, _round_up(B, 8))
    B_pad = _round_up(B, TB)

    # Zero-pad x (rows + cols) and w1 (rows); cast the big streams to bf16.
    x_p = jnp.pad(x, ((0, B_pad - B), (0, F_pad - F_in))).astype(jnp.bfloat16)
    w1_p = jnp.pad(w1, ((0, F_pad - F_in), (0, 0))).astype(jnp.bfloat16)

    grid = (B_pad // TB,)

    def resident(shape):
        # Weights / biases: same block every step -> stay VMEM-resident.
        return pl.BlockSpec(shape, lambda i: (0, 0))

    # Advisory cost estimate (helps XLA schedule around the custom call).
    flops = 2 * B_pad * (F_pad * 24 + 24 * 32 + 32 * 2)
    bytes_accessed = (
        x_p.size * 2 + w1_p.size * 2
        + (b1.size + w2.size + b2.size + w3.size + b3.size) * 4
        + B_pad * 2 * 4
    )

    # VMEM budget: double-buffered x/out tiles + (double-buffered) weights,
    # plus headroom for compiler temporaries. Clamp to stay inside v7x's
    # 64 MiB physical VMEM.
    weights_bytes = F_pad * 24 * 2 + (24 * 32 + 32 * 2 + 24 + 32 + 2) * 4
    vmem_need = 2 * (TB * F_pad * 2 + TB * 2 * 4) + 2 * weights_bytes
    vmem_limit = int(min(max(2 * vmem_need, 16 << 20), 40 << 20))

    out = pl.pallas_call(
        dqn_kernel,
        out_shape=jax.ShapeDtypeStruct((B_pad, 2), jnp.float32),
        grid=grid,
        in_specs=[
            pl.BlockSpec((TB, F_pad), lambda i: (i, 0)),   # streamed activations
            resident((F_pad, 24)),
            resident((1, 24)),
            resident((24, 32)),
            resident((1, 32)),
            resident((32, 2)),
            resident((1, 2)),
        ],
        out_specs=pl.BlockSpec((TB, 2), lambda i: (i, 0)),
        compiler_params=pltpu.CompilerParams(
            dimension_semantics=("parallel",),     # shard batch tiles on v7x's 2 TCs
            vmem_limit_bytes=vmem_limit,
        ),
        cost_estimate=pl.CostEstimate(
            flops=flops, transcendentals=0, bytes_accessed=bytes_accessed
        ),
    )(x_p, w1_p, b1, w2, b2, w3, b3)

    return out[:B]


def init_params(key, img_h, img_w):
    """Deterministic init matching torch.nn.Linear's default U(-1/sqrt(fan_in), ...)."""
    f_in = img_h * img_w * 3
    dims = [(f_in, 24), (24, 32), (32, 2)]
    params = []
    for (din, dout) in dims:
        key, kw, kb = jax.random.split(key, 3)
        bound = 1.0 / (din ** 0.5)
        w = jax.random.uniform(kw, (din, dout), jnp.float32, -bound, bound)
        b = jax.random.uniform(kb, (1, dout), jnp.float32, -bound, bound)
        params += [w, b]
    return tuple(params)


if __name__ == "__main__":
    B, C, H, W = 2, 3, 16, 16
    key = jax.random.PRNGKey(0)
    key, kx = jax.random.split(key)
    x = jax.random.normal(kx, (B, C, H, W), jnp.float32)

    params = init_params(key, H, W)
    out = dqn_forward(x, params)
    jax.block_until_ready(out)

    # Sanity check against plain-JAX f32 reference of the same math.
    # (Tolerance loosened because the first matmul's inputs are bf16.)
    w1, b1, w2, b2, w3, b3 = params
    xf = x.reshape(B, -1)
    ref = jnp.maximum(xf @ w1 + b1, 0.0)
    ref = jnp.maximum(ref @ w2 + b2, 0.0)
    ref = ref @ w3 + b3
    assert out.shape == (B, 2)
    assert jnp.allclose(out, ref, atol=2e-2, rtol=2e-2)

    print("KERNEL_OK")
</pallas_src>

<mosaic_0001>
module attributes {stable_mosaic.version = 11 : i64} {
  func.func @dqn_kernel(%arg0: i32, %arg1: memref<8x768xbf16, #tpu.memory_space<vmem>>, %arg2: memref<768x24xbf16, #tpu.memory_space<vmem>>, %arg3: memref<1x24xf32, #tpu.memory_space<vmem>>, %arg4: memref<24x32xf32, #tpu.memory_space<vmem>>, %arg5: memref<1x32xf32, #tpu.memory_space<vmem>>, %arg6: memref<32x2xf32, #tpu.memory_space<vmem>>, %arg7: memref<1x2xf32, #tpu.memory_space<vmem>>, %arg8: memref<8x2xf32, #tpu.memory_space<vmem>>) attributes {dimension_semantics = [#tpu.dimension_semantics<parallel>], iteration_bounds = array<i64: 1>, scalar_prefetch = 0 : i64, scratch_operands = 0 : i64, tpu.core_type = #tpu.core_type<tc>, window_params = [{transform_indices = @transform_0, window_bounds = array<i64: 8, 768>}, {pipeline_mode = #tpu.pipeline_mode<synchronous>, transform_indices = @transform_1, window_bounds = array<i64: 768, 24>}, {pipeline_mode = #tpu.pipeline_mode<synchronous>, transform_indices = @transform_2, window_bounds = array<i64: 1, 24>}, {pipeline_mode = #tpu.pipeline_mode<synchronous>, transform_indices = @transform_3, window_bounds = array<i64: 24, 32>}, {pipeline_mode = #tpu.pipeline_mode<synchronous>, transform_indices = @transform_4, window_bounds = array<i64: 1, 32>}, {pipeline_mode = #tpu.pipeline_mode<synchronous>, transform_indices = @transform_5, window_bounds = array<i64: 32, 2>}, {pipeline_mode = #tpu.pipeline_mode<synchronous>, transform_indices = @transform_6, window_bounds = array<i64: 1, 2>}, {transform_indices = @transform_7, window_bounds = array<i64: 8, 2>}]} {
    %c0 = arith.constant 0 : index
    %c0_0 = arith.constant 0 : index
    %0 = vector.load %arg1[%c0, %c0_0] : memref<8x768xbf16, #tpu.memory_space<vmem>>, vector<8x768xbf16>
    %c0_1 = arith.constant 0 : index
    %c0_2 = arith.constant 0 : index
    %1 = vector.load %arg2[%c0_1, %c0_2] : memref<768x24xbf16, #tpu.memory_space<vmem>>, vector<768x24xbf16>
    %cst = arith.constant dense<0.000000e+00> : vector<8x24xf32>
    %2 = tpu.matmul %0, %1, %cst {dimension_numbers = #tpu.dot_dimension_numbers<[1], [0], [0], [1], [0, 0, 1, 1], [], []>} : vector<8x768xbf16>, vector<768x24xbf16>, vector<8x24xf32> -> vector<8x24xf32>
    %c0_3 = arith.constant 0 : index
    %c0_4 = arith.constant 0 : index
    %3 = vector.load %arg3[%c0_3, %c0_4] : memref<1x24xf32, #tpu.memory_space<vmem>>, vector<1x24xf32>
    %4 = vector.broadcast %3 : vector<1x24xf32> to vector<8x24xf32>
    %5 = arith.addf %2, %4 : vector<8x24xf32>
    %cst_5 = arith.constant 0.000000e+00 : f32
    %6 = vector.broadcast %cst_5 : f32 to vector<8x24xf32>
    %7 = arith.maximumf %5, %6 : vector<8x24xf32>
    %c0_6 = arith.constant 0 : index
    %c0_7 = arith.constant 0 : index
    %8 = vector.load %arg4[%c0_6, %c0_7] : memref<24x32xf32, #tpu.memory_space<vmem>>, vector<24x32xf32>
    %cst_8 = arith.constant dense<0.000000e+00> : vector<8x32xf32>
    %9 = tpu.matmul %7, %8, %cst_8 {dimension_numbers = #tpu.dot_dimension_numbers<[1], [0], [0], [1], [0, 0, 1, 1], [], []>} : vector<8x24xf32>, vector<24x32xf32>, vector<8x32xf32> -> vector<8x32xf32>
    %c0_9 = arith.constant 0 : index
    %c0_10 = arith.constant 0 : index
    %10 = vector.load %arg5[%c0_9, %c0_10] : memref<1x32xf32, #tpu.memory_space<vmem>>, vector<1x32xf32>
    %11 = vector.broadcast %10 : vector<1x32xf32> to vector<8x32xf32>
    %12 = arith.addf %9, %11 : vector<8x32xf32>
    %cst_11 = arith.constant 0.000000e+00 : f32
    %13 = vector.broadcast %cst_11 : f32 to vector<8x32xf32>
    %14 = arith.maximumf %12, %13 : vector<8x32xf32>
    %c0_12 = arith.constant 0 : index
    %c0_13 = arith.constant 0 : index
    %15 = vector.load %arg6[%c0_12, %c0_13] : memref<32x2xf32, #tpu.memory_space<vmem>>, vector<32x2xf32>
    %cst_14 = arith.constant dense<0.000000e+00> : vector<8x2xf32>
    %16 = tpu.matmul %14, %15, %cst_14 {dimension_numbers = #tpu.dot_dimension_numbers<[1], [0], [0], [1], [0, 0, 1, 1], [], []>} : vector<8x32xf32>, vector<32x2xf32>, vector<8x2xf32> -> vector<8x2xf32>
    %c0_15 = arith.constant 0 : index
    %c0_16 = arith.constant 0 : index
    %17 = vector.load %arg7[%c0_15, %c0_16] : memref<1x2xf32, #tpu.memory_space<vmem>>, vector<1x2xf32>
    %18 = vector.broadcast %17 : vector<1x2xf32> to vector<8x2xf32>
    %19 = arith.addf %16, %18 : vector<8x2xf32>
    %c0_17 = arith.constant 0 : index
    %c0_18 = arith.constant 0 : index
    %20 = vector.load %arg8[%c0_17, %c0_18] : memref<8x2xf32, #tpu.memory_space<vmem>>, vector<8x2xf32>
    tpu.vector_store %arg8[%c0_17, %c0_18], %19 {strides = array<i32>} : memref<8x2xf32, #tpu.memory_space<vmem>>, vector<8x2xf32>,
    return
  }
  func.func @transform_0(%arg0: i32) -> (i32, i32) {
    %c0_i32 = arith.constant 0 : i32
    %c0_i32_0 = arith.constant 0 : i32
    return %arg0, %c0_i32 : i32, i32
  }
  func.func @transform_1(%arg0: i32) -> (i32, i32) {
    %c0_i32 = arith.constant 0 : i32
    %c0_i32_0 = arith.constant 0 : i32
    %c0_i32_1 = arith.constant 0 : i32
    return %c0_i32, %c0_i32_0 : i32, i32
  }
  func.func @transform_2(%arg0: i32) -> (i32, i32) {
    %c0_i32 = arith.constant 0 : i32
    %c0_i32_0 = arith.constant 0 : i32
    %c0_i32_1 = arith.constant 0 : i32
    return %c0_i32, %c0_i32_0 : i32, i32
  }
  func.func @transform_3(%arg0: i32) -> (i32, i32) {
    %c0_i32 = arith.constant 0 : i32
    %c0_i32_0 = arith.constant 0 : i32
    %c0_i32_1 = arith.constant 0 : i32
    return %c0_i32, %c0_i32_0 : i32, i32
  }
  func.func @transform_4(%arg0: i32) -> (i32, i32) {
    %c0_i32 = arith.constant 0 : i32
    %c0_i32_0 = arith.constant 0 : i32
    %c0_i32_1 = arith.constant 0 : i32
    return %c0_i32, %c0_i32_0 : i32, i32
  }
  func.func @transform_5(%arg0: i32) -> (i32, i32) {
    %c0_i32 = arith.constant 0 : i32
    %c0_i32_0 = arith.constant 0 : i32
    %c0_i32_1 = arith.constant 0 : i32
    return %c0_i32, %c0_i32_0 : i32, i32
  }
  func.func @transform_6(%arg0: i32) -> (i32, i32) {
    %c0_i32 = arith.constant 0 : i32
    %c0_i32_0 = arith.constant 0 : i32
    %c0_i32_1 = arith.constant 0 : i32
    return %c0_i32, %c0_i32_0 : i32, i32
  }
  func.func @transform_7(%arg0: i32) -> (i32, i32) {
    %c0_i32 = arith.constant 0 : i32
    %c0_i32_0 = arith.constant 0 : i32
    return %arg0, %c0_i32 : i32, i32
  }
}

</mosaic_0001>

<bundles_post_ra>
// kernel: tpu_custom_call.1
= control target key start
LH: loop header
LB: loop body
LE: loop exit
PB: predicated region body
PF: predicated region fallthrough
CT: control target
= control target key end

     0   :  { %v959_v57 = vmov 0.0|0.0   ;;  %v960_v61 = vmov 0.0   ;;  %vm961_vm0 = vmmov 0   ;;  %vm573_vm1 = vcmask 195584   ;;  %s1190_s1 = inlined_call_operand.vmem [shape: bf16[768,24], index: 1, kind: input, shape index: {}]   ;;  %s1191_s0 = inlined_call_operand.vmem [shape: bf16[8,768], index: 0, kind: input, shape index: {}]   ;;  %s1192_s3 = inlined_call_operand.vmem [shape: f32[24,32], index: 3, kind: input, shape index: {}]   ;;  %s1193_s2 = inlined_call_operand.vmem [shape: f32[1,24], index: 2, kind: input, shape index: {}]   ;;  %s1194_s5 = inlined_call_operand.vmem [shape: f32[32,2], index: 5, kind: input, shape index: {}]   ;;  %s1195_s4 = inlined_call_operand.vmem [shape: f32[1,32], index: 4, kind: input, shape index: {}]   ;;  %s1196_s6 = inlined_call_operand.vmem [shape: f32[1,2], index: 6, kind: input, shape index: {}]   ;;  %s1197_s7 = inlined_call_operand.vmem [shape: f32[8,2], index: 7, kind: output, shape index: {}]  }
   0x1   :  { %v905_v0 = vld [vmem:[%s1190_s1 + $0x40] sm:$0xff]   ;;  %v909_v4 = vld [vmem:[%s1190_s1 + $0x48] sm:$0xff]   ;;  %v913_v8 = vld [vmem:[%s1190_s1 + $0x50] sm:$0xff]   ;;  %vm659_vm2 = vcmask 261120   ;;  %vm733_vm3 = vcmask 15360  }
   0x2   :  { %v906_v1 = vld [vmem:[%s1190_s1] sm:$0xff]   ;;  %798 = vmatprep.subr.bf16.mxu0 %v905_v0  ;;  %v910_v5 = vld [vmem:[%s1190_s1 + $0x8] sm:$0xff]   ;;  %v914_v9 = vld [vmem:[%s1190_s1 + $0x10] sm:$0xff]  }
   0x3   :  { %v907_v2 = vld [vmem:[%s1190_s1 + $0xc0] sm:$0xff]   ;;  %799 = vmatpush3.bf16.msra.mxu0 %v906_v1  ;;  %v911_v6 = vld [vmem:[%s1190_s1 + $0xc8] sm:$0xff]   ;;  %v915_v10 = vld [vmem:[%s1190_s1 + $0xd0] sm:$0xff]  }
   0x4   :  { %v908_v3 = vld [vmem:[%s1190_s1 + $0x80] sm:$0xff]   ;;  %820 = vmatprep.subr.bf16.mxu1 %v907_v2  ;;  %800 = vmatprep.subr.bf16.mxu0 %v909_v4  ;;  %v912_v7 = vld [vmem:[%s1190_s1 + $0x88] sm:$0xff]   ;;  %v916_v11 = vld [vmem:[%s1190_s1 + $0x90] sm:$0xff]  }
   0x5   :  { %821 = vmatpush3.bf16.msra.mxu1 %v908_v3  ;;  %v917_v12 = vld [vmem:[%s1190_s1 + $0x58] sm:$0xff]   ;;  %v921_v16 = vld [vmem:[%s1190_s1 + $0x60] sm:$0xff]   ;;  %v925_v20 = vld [vmem:[%s1190_s1 + $0x68] sm:$0xff]  }
   0x6   :  { %822 = vmatprep.subr.bf16.mxu1 %v911_v6  ;;  %v918_v13 = vld [vmem:[%s1190_s1 + $0x18] sm:$0xff]   ;;  %v922_v17 = vld [vmem:[%s1190_s1 + $0x20] sm:$0xff]   ;;  %v926_v21 = vld [vmem:[%s1190_s1 + $0x28] sm:$0xff]  }
   0x7   :  { %801 = vmatpush3.bf16.msra.mxu0 %v910_v5  ;;  %v919_v14 = vld [vmem:[%s1190_s1 + $0xd8] sm:$0xff]   ;;  %v923_v18 = vld [vmem:[%s1190_s1 + $0xe0] sm:$0xff]   ;;  %v927_v22 = vld [vmem:[%s1190_s1 + $0xe8] sm:$0xff]  }
   0x8   :  { %802 = vmatprep.subr.bf16.mxu0 %v913_v8  ;;  %v920_v15 = vld [vmem:[%s1190_s1 + $0x98] sm:$0xff]   ;;  %v924_v19 = vld [vmem:[%s1190_s1 + $0xa0] sm:$0xff]   ;;  %v928_v23 = vld [vmem:[%s1190_s1 + $0xa8] sm:$0xff]  }
   0x9   :  { %823 = vmatpush3.bf16.msra.mxu1 %v912_v7  ;;  %v929_v24 = vld [vmem:[%s1190_s1 + $0x70] sm:$0xff]   ;;  %v933_v28 = vld [vmem:[%s1190_s1 + $0x78] sm:$0xff]   ;;  %v27_v31 = vld [vmem:[%s1191_s0] sm:$0xff] }
   0xa   :  { %824 = vmatprep.subr.bf16.mxu1 %v915_v10  ;;  %v930_v25 = vld [vmem:[%s1190_s1 + $0x30] sm:$0xff]   ;;  %v934_v29 = vld [vmem:[%s1190_s1 + $0x38] sm:$0xff]   ;;  %v740_v32 = vcombine.low %v27_v31, %v27_v31  ;;  %v741_v33 = vcombine.high %v27_v31, %v27_v31  ;;  %v939_v35 = vld [vmem:[%s1190_s1 + $0x140] sm:$0xff]  }
   0xb   :  { %803 = vmatpush3.bf16.msra.mxu0 %v914_v9  ;;  %v931_v26 = vld [vmem:[%s1190_s1 + $0xf0] sm:$0xff]   ;;  %v935_v30 = vld [vmem:[%s1190_s1 + $0xf8] sm:$0xff]   ;;  %v28_v36 = vld [vmem:[%s1191_s0 + $0x8] sm:$0xff] }
   0xc   :  { %804 = vmatprep.subr.bf16.mxu0 %v917_v12  ;;  %v932_v27 = vld [vmem:[%s1190_s1 + $0xb0] sm:$0xff]   ;;  %v938_v34 = vld [vmem:[%s1190_s1 + $0xb8] sm:$0xff]   ;;  %474 = vmatprep.mubr.bf16.mxu0 %v741_v33  ;;  %v742_v37 = vcombine.low %v28_v36, %v28_v36  ;;  %v743_v38 = vcombine.high %v28_v36, %v28_v36  ;;  %v942_v39 = vld [vmem:[%s1190_s1 + $0x100] sm:$0xff]  }
   0xd   :  { %825 = vmatpush3.bf16.msra.mxu1 %v916_v11  ;;  %v943_v40 = vld [vmem:[%s1190_s1 + $0x148] sm:$0xff]   ;;  %v945_v42 = vld [vmem:[%s1190_s1 + $0x150] sm:$0xff]   ;;  %v947_v44 = vld [vmem:[%s1190_s1 + $0x158] sm:$0xff]  }
   0xe   :  { %826 = vmatprep.subr.bf16.mxu1 %v919_v14  ;;  %514 = vmatprep.mubr.bf16.mxu1 %v743_v38  ;;  %v944_v41 = vld [vmem:[%s1190_s1 + $0x108] sm:$0xff]   ;;  %v946_v43 = vld [vmem:[%s1190_s1 + $0x110] sm:$0xff]   ;;  %v948_v45 = vld [vmem:[%s1190_s1 + $0x118] sm:$0xff]  }
   0xf   :  { %805 = vmatpush3.bf16.msra.mxu0 %v918_v13  ;;  %v949_v46 = vld [vmem:[%s1190_s1 + $0x160] sm:$0xff]   ;;  %v29_v48 = vld [vmem:[%s1191_s0 + $0x10] sm:$0xff]  ;;  %v951_v49 = vld [vmem:[%s1190_s1 + $0x168] sm:$0xff]  }
  0x10   :  { %806 = vmatprep.subr.bf16.mxu0 %v921_v16  ;;  %v950_v47 = vld [vmem:[%s1190_s1 + $0x120] sm:$0xff]   ;;  %v745_v50 = vcombine.high %v29_v48, %v29_v48  ;;  %v952_v51 = vld [vmem:[%s1190_s1 + $0x128] sm:$0xff]   ;;  %v953_v52 = vld [vmem:[%s1190_s1 + $0x170] sm:$0xff]   ;;  %v744_v56 = vcombine.low %v29_v48, %v29_v48 }
  0x11   :  { %827 = vmatpush3.bf16.msra.mxu1 %v920_v15  ;;  %v954_v53 = vld [vmem:[%s1190_s1 + $0x130] sm:$0xff]   ;;  %v955_v54 = vld [vmem:[%s1190_s1 + $0x178] sm:$0xff]   ;;  %v563_v58 = vld [vmem:[%s1192_s3] sm:$0xff] }
  0x12   :  { %828 = vmatprep.subr.bf16.mxu1 %v923_v18  ;;  %v956_v55 = vld [vmem:[%s1190_s1 + $0x138] sm:$0xff]   ;;  %v564_v59 = vld [vmem:[%s1192_s3 + $0x8] sm:$0xff]  ;;  %v565_v62 = vld [vmem:[%s1192_s3 + $0x10] sm:$0xff] }
  0x13   :  { %807 = vmatpush3.bf16.msra.mxu0 %v922_v17  ;;  %v894_v60 = vpack.c.bf16 %v564_v59, %v563_v58  ;;  %v739_v0 = vld [vmem:[%s1193_s2] ss:$0 sm:$0xff]  ;;  %v649_v17 = vld [vmem:[%s1194_s5 + $0x8] sm:$0xff] }
  0x14   :  { %808 = vmatprep.subr.bf16.mxu0 %v925_v20  ;;  %v648_v16 = vld [vmem:[%s1194_s5] sm:$0xff] }
  0x15   :  { %829 = vmatpush3.bf16.msra.mxu1 %v924_v19  ;;  %v897_v20 = vpack.c.bf16 %v649_v17, %v648_v16 }
  0x16   :  { %830 = vmatprep.subr.bf16.mxu1 %v927_v22  ;;  %v650_v22 = vld [vmem:[%s1194_s5 + $0x10] sm:$0xff] }
  0x17   :  { %809 = vmatpush3.bf16.msra.mxu0 %v926_v21 }
  0x18   :  { %810 = vmatprep.subr.bf16.mxu0 %v929_v24 }
  0x19   :  { %831 = vmatpush3.bf16.msra.mxu1 %v928_v23  ;;  %v651_v23 = vld [vmem:[%s1194_s5 + $0x18] sm:$0xff] }
  0x1a   :  { %832 = vmatprep.subr.bf16.mxu1 %v931_v26  ;;  %v900_v24 = vpack.c.bf16 %v651_v23, %v650_v22 }
  0x1b   :  { %811 = vmatpush3.bf16.msra.mxu0 %v930_v25  ;;  %v794_v25 = vld [vmem:[%s1195_s4] ss:$0 sm:$0xff] }
  0x1c   :  { %812 = vmatprep.subr.bf16.mxu0 %v933_v28 }
  0x1d   :  { %833 = vmatpush3.bf16.msra.mxu1 %v932_v27 }
  0x1e   :  { %834 = vmatprep.subr.bf16.mxu1 %v935_v30  ;;  %v796_v30 = vld [vmem:[%s1196_s6] ss:$0 sm:$0xff] }
  0x1f   :  { %813 = vmatpush3.bf16.msra.mxu0 %v934_v29 }
  0x20   :  { %842 = vmatprep.subr.bf16.mxu0 %v939_v35 }
  0x21   :  { %835 = vmatpush3.bf16.msra.mxu1 %v938_v34 }
  0x22   :  { %475 = vmatmul.mubr.bf16.vlgmr.msra.gmra.mrb[0].mxu0 %v740_v32  ;;  %893 = vmatprep.subr.bf16.mxu1 %v959_v57 }
  0x23   :  { %843 = vmatpush3.bf16.msra.mxu0 %v942_v39  ;;  %554 = vmatprep.mubr.bf16.mxu0 %v745_v50 }
  0x24   :  { %515 = vmatmul.mubr.bf16.vlgmr.msra.gmra.mrb[0].mxu1 %v742_v37  ;;  %844 = vmatprep.subr.bf16.mxu0 %v943_v40 }
  0x25   :  { %895 = vmatpush3.bf16.msra.mxu1 %v894_v60  ;;  %879 = vmatprep.mubr.msk.f32.mxu1 %vm961_vm0, %v960_v61 }
  0x26   :  { %877 = vmatprep.subr.mxu1 %v960_v61 }
  0x27   :  { %845 = vmatpush3.bf16.msra.mxu0 %v944_v41 }
  0x28   :  { %846 = vmatprep.subr.bf16.mxu0 %v945_v42 }
  0x29   :  { %878 = vmatpush3.msra.mxu1 %v565_v62 }
  0x2a   :  { %896 = vmatprep.subr.bf16.mxu1 %v959_v57 }
  0x2b   :  { %847 = vmatpush3.bf16.msra.mxu0 %v946_v43 }
  0x2c   :  { %848 = vmatprep.subr.bf16.mxu0 %v947_v44 }
  0x2f   :  { %849 = vmatpush3.bf16.msra.mxu0 %v948_v45 }
  0x30   :  { %850 = vmatprep.subr.bf16.mxu0 %v949_v46 }
  0x33   :  { %851 = vmatpush3.bf16.msra.mxu0 %v950_v47 }
  0x34   :  { %852 = vmatprep.subr.bf16.mxu0 %v951_v49 }
  0x37   :  { %853 = vmatpush3.bf16.msra.mxu0 %v952_v51 }
  0x38   :  { %854 = vmatprep.subr.bf16.mxu0 %v953_v52 }
  0x3b   :  { %855 = vmatpush3.bf16.msra.mxu0 %v954_v53 }
  0x3c   :  { %856 = vmatprep.subr.bf16.mxu0 %v955_v54 }
  0x3f   :  { %857 = vmatpush3.bf16.msra.mxu0 %v956_v55 }
  0x42   :  { %555 = vmatmul.mubr.bf16.vlgmr.msra.gmra.mrb[4].mxu0 %v744_v56 }
  0xf5   :  { %v814_v63 = vpop.f32.mrb[0].mxu0 }
  0xf6   :  { %v815_v1 = vpop.f32.mrb[1].mxu0 }
  0xf7   :  { %v816_v2 = vadd.f32 %v815_v1, %v814_v63  ;;  %v817_v3 = vpop.f32.mrb[2].mxu0  ;;  %v836_v4 = vpop.f32.mrb[0].mxu1 }
  0xf8   :  { %v818_v5 = vpop.f32.mrb[3].mxu0  ;;  %v837_v6 = vpop.f32.mrb[1].mxu1 }
  0xf9   :  { %v477_v7 = vadd.f32 %v816_v2, %v739_v0  ;;  %v838_v8 = vadd.f32 %v837_v6, %v836_v4  ;;  %v839_v9 = vpop.f32.mrb[2].mxu1 }
  0xfa   :  { %v840_v10 = vpop.f32.mrb[3].mxu1 }
  0xfb   :  { %v517_v11 = vadd.f32 %v838_v8, %v477_v7 }
 0x115   :  { %v858_v12 = vpop.f32.mrb[4].mxu0 }
 0x116   :  { %v859_v13 = vpop.f32.mrb[5].mxu0 }
 0x117   :  { %v860_v14 = vadd.f32 %v859_v13, %v858_v12  ;;  %v861_v15 = vpop.f32.mrb[6].mxu0 }
 0x118   :  { %v862_v18 = vpop.f32.mrb[7].mxu0 }
 0x119   :  { %v557_v19 = vadd.f32 %v860_v14, %v517_v11 }
 0x11b   :  { %v562_v21 = vmax.f32 %v557_v19, 0.0 }
 0x11d   :  { %880 = vmatmul.mubr.msk.f32.vlgmr.msra.gmra.mrb[4].mxu1 %vm573_vm1, %v562_v21 }
 0x11e   :  { %898 = vmatpush3.bf16.msra.mxu1 %v897_v20  ;;  %890 = vmatprep.mubr.msk.f32.mxu1 %vm961_vm0, %v960_v61 }
 0x11f   :  { %899 = vmatprep.subr.bf16.mxu1 %v959_v57 }
 0x122   :  { %901 = vmatpush3.bf16.msra.mxu1 %v900_v24 }
 0x1f0   :  { %v643_v26 = vpop.f32.mrb[4].mxu1 }
 0x1f1   :  { %v644_v27 = vadd.f32 %v794_v25, %v643_v26  ;;  %v881_v28 = vpop.f32.mrb[5].mxu1 }
 0x1f3   :  { %v647_v29 = vmax.f32 %v644_v27, 0.0 }
 0x1f5   :  { %891 = vmatmul.mubr.msk.f32.vlgmr.msra.gmra.mrb[6].mxu1 %vm659_vm2, %v647_v29 }
 0x2c8   :  { %v729_v31 = vpop.f32.mrb[6].mxu1 }
 0x2c9   :  { %v730_v32 = vadd.f32 %v796_v30, %v729_v31  ;;  %v892_v33 = vpop.f32.mrb[7].mxu1 }
 0x2cb   :  { %734 = vst.msk [vmem:[%s1197_s7] sm:$0xff] %vm733_vm3, %v730_v32 }

</bundles_post_ra>
